<compile_context>
chip_gen: v7x
topology: tpu7x:2x2x1
jax: 0.10.0
libtpu: 0.0.40
codegen_flags: <defaults>
</compile_context>

<pallas_src>
import jax
import jax.numpy as jnp
from jax.experimental import pallas as pl
from jax.experimental.pallas import tpu as pltpu

_BN_EPS = 1e-5


# ---------------------------------------------------------------------------
# Shared dense-tail math: Linear -> ReLU -> BatchNorm1d(train) -> Linear.
# `pooled_sum` is the SUM over H*W; the 1/(H*W) scale is folded into w1.
# ---------------------------------------------------------------------------
def _tail_math(pooled_sum, w1, b1, gamma, beta, w2, b2):
    h = jnp.dot(pooled_sum, w1, preferred_element_type=jnp.float32) + b1
    h = jnp.maximum(h, 0.0)
    # BatchNorm1d training mode: batch mean, biased variance, eps=1e-5.
    mu = jnp.mean(h, axis=0, keepdims=True)
    var = jnp.mean(jnp.square(h - mu), axis=0, keepdims=True)
    hn = (h - mu) * jax.lax.rsqrt(var + _BN_EPS) * gamma + beta
    # NOTE: domain_num (~3-5) < 128 means a masked partial store for the
    # logits; negligible here since the tail output is tiny.
    return jnp.dot(hn, w2, preferred_element_type=jnp.float32) + b2


# ---------------------------------------------------------------------------
# Kernel 1: streamed global-average-pool accumulation (HBM-bound phase).
#   x_ref       : (t_n, C, t_hw) block of x viewed as (N, C, HW) -- native
#                 NCHW layout, HW on the 128-lane axis (lane-dense DMA).
#   partial_ref : (t_n, C) resident f32 accumulator block of the partial-sum
#                 output (n_parts, N, C); the leading dim is squeezed.
# ---------------------------------------------------------------------------
def _pool_kernel(x_ref, partial_ref):
    hw_step = pl.program_id(2)

    @pl.when(hw_step == 0)
    def _():
        partial_ref[...] = jnp.zeros_like(partial_ref)

    # Upcast before the add (v5e VPU/XLU have no bf16 math); the cross-lane
    # spatial reduce (XLU) hides under the DMA of the next block.
    partial_ref[...] += jnp.sum(x_ref[...].astype(jnp.float32), axis=-1)


# ---------------------------------------------------------------------------
# Kernel 2: tiny dense tail, fully VMEM-resident.
# ---------------------------------------------------------------------------
def _tail_kernel(partial_ref, w1_ref, b1_ref, gamma_ref, beta_ref,
                 w2_ref, b2_ref, out_ref):
    # partial_ref: (n_parts, N, C) partial spatial sums -> reduce here so the
    # wrapper never launches an extra XLA op for it.
    pooled_sum = jnp.sum(partial_ref[...], axis=0)
    out_ref[...] = _tail_math(pooled_sum, w1_ref[...], b1_ref[...],
                              gamma_ref[...], beta_ref[...],
                              w2_ref[...], b2_ref[...])


# ---------------------------------------------------------------------------
# Kernel 3: small-input fast path -- pool + tail fused in one call.
# ---------------------------------------------------------------------------
def _fused_kernel(x_ref, w1_ref, b1_ref, gamma_ref, beta_ref,
                  w2_ref, b2_ref, out_ref):
    pooled_sum = jnp.sum(x_ref[...].astype(jnp.float32), axis=-1)   # (N, C)
    out_ref[...] = _tail_math(pooled_sum, w1_ref[...], b1_ref[...],
                              gamma_ref[...], beta_ref[...],
                              w2_ref[...], b2_ref[...])


# ---------------------------------------------------------------------------
# Hardware / tiling helpers.
# ---------------------------------------------------------------------------
def _vmem_capacity_bytes():
    try:
        return int(pltpu.get_tpu_info().vmem_capacity_bytes)
    except Exception:
        return 64 << 20   # conservative fallback (v7x per-core VMEM)


def _pick_n_tile(n):
    # Pooled-output block constraint: t_n multiple of 8 or == N.
    return 8 if (n > 8 and n % 8 == 0) else n


def _pick_hw_tile(hw, row_bytes, target_bytes):
    # Legal lane-dim tiles: full HW, or divisors of HW that are multiples of
    # 128.  Prefer the largest legal tile that fits the block budget.
    cands = [d for d in range(128, hw, 128) if hw % d == 0]
    fitting = [d for d in cands + [hw] if d * row_bytes <= target_bytes]
    if fitting:
        return max(fitting)
    return min(cands) if cands else hw


# ---------------------------------------------------------------------------
# Wrapper.
# ---------------------------------------------------------------------------
def domain_classifier_forward(x_nchw, params, *, block_bytes_target=None,
                              fused_bytes_threshold=4 << 20):
    """Forward pass of DomainClassifier (dense=False).

    x_nchw : (N, C, H, W) feature map, consumed in its native layout/dtype
             (bf16 inputs are streamed as-is; accumulation is always f32).
    params : (w1, b1, gamma, beta, w2, b2); linear weights stored (in, out).
    """
    w1, b1, gamma, beta, w2, b2 = params
    N, C, H, W = x_nchw.shape
    HW = H * W
    D = w2.shape[1]
    hidden = w1.shape[1]

    if N < 2:
        # Matches PyTorch: BatchNorm1d in training mode needs >1 sample.
        raise ValueError("training-mode BatchNorm1d requires batch size >= 2")

    # Free view (no data movement): native NCHW flattened to (N, C, HW).
    x = x_nchw.reshape(N, C, HW)
    itemsize = x.dtype.itemsize

    # Fold the 1/(H*W) average-pool scale into the first linear weight.
    w1_scaled = w1.astype(jnp.float32) * jnp.float32(1.0 / HW)

    vmem_cap = _vmem_capacity_bytes()
    vmem_spec = pl.BlockSpec(memory_space=pltpu.MemorySpace.VMEM)

    # ---- Small-input fast path: one fused, fully VMEM-resident call. ----
    fused_bytes = (N * C * HW * (itemsize + 4)            # x + f32 upcast
                   + 4 * (C * hidden + hidden * D + N * C + N * hidden))
    if fused_bytes <= min(fused_bytes_threshold, vmem_cap // 8):
        return pl.pallas_call(
            _fused_kernel,
            out_shape=jax.ShapeDtypeStruct((N, D), jnp.float32),
            in_specs=[vmem_spec] * 7,
            out_specs=vmem_spec,
        )(x, w1_scaled, b1, gamma, beta, w2, b2)

    # ---- Streaming path: grid over (part, N-tiles, HW-tiles). ----
    if block_bytes_target is None:
        # Big tiles amortize per-step overhead on 128 MiB parts (v5e/v6e);
        # capped so 2x double-buffered x blocks + pooled blocks + slack stay
        # well inside v7x's 64 MiB VMEM.
        block_bytes_target = int(min(16 << 20,
                                     max(2 << 20, (vmem_cap - (24 << 20)) // 4)))

    t_n = _pick_n_tile(N)
    t_hw = _pick_hw_tile(HW, t_n * C * itemsize, block_bytes_target)
    grid_n = N // t_n
    grid_hw = HW // t_hw

    # Guarantee >=2 "parallel" grid steps so both v7x TensorCores issue DMAs:
    # with a single N-tile, split the HW reduction 2-ways into partial sums.
    n_parts = 2 if (grid_n == 1 and grid_hw >= 2 and grid_hw % 2 == 0) else 1
    hw_per_part = grid_hw // n_parts

    x_block_bytes = t_n * C * t_hw * itemsize
    partial_block_bytes = t_n * C * 4
    vmem_limit = int(min(max(vmem_cap - (4 << 20), 1 << 20),
                         2 * x_block_bytes + 2 * partial_block_bytes + (4 << 20)))

    partials = pl.pallas_call(
        _pool_kernel,
        out_shape=jax.ShapeDtypeStruct((n_parts, N, C), jnp.float32),
        grid_spec=pltpu.PrefetchScalarGridSpec(
            num_scalar_prefetch=0,
            grid=(n_parts, grid_n, hw_per_part),
            in_specs=[pl.BlockSpec(
                (t_n, C, t_hw),
                lambda p, i, h: (i, 0, p * hw_per_part + h))],
            out_specs=pl.BlockSpec(
                (None, t_n, C),
                lambda p, i, h: (p, i, 0)),
        ),
        compiler_params=pltpu.CompilerParams(
            dimension_semantics=("parallel", "parallel", "arbitrary"),
            vmem_limit_bytes=vmem_limit),
        cost_estimate=pl.CostEstimate(
            flops=int(N) * int(C) * int(HW),
            transcendentals=0,
            bytes_accessed=int(N) * int(C) * int(HW) * int(itemsize)
                           + int(n_parts) * int(N) * int(C) * 4),
    )(x)

    # Tiny dense tail, fully VMEM-resident.  Guarded against absurd batch
    # sizes instead of silently OOM-ing.
    # TODO(synk): tile the dense tail over N (with masked BatchNorm batch
    # statistics) if very large batches ever matter here.
    tail_bytes = 4 * (n_parts * N * C + C * hidden + hidden * D
                      + 4 * N * hidden + N * D)
    if tail_bytes > vmem_cap // 2:
        raise ValueError("dense tail too large for a single VMEM-resident call")

    logits = pl.pallas_call(
        _tail_kernel,
        out_shape=jax.ShapeDtypeStruct((N, D), jnp.float32),
        in_specs=[vmem_spec] * 7,
        out_specs=vmem_spec,
    )(partials, w1_scaled, b1, gamma, beta, w2, b2)
    return logits


# ---------------------------------------------------------------------------
# Parameters + pure-JAX reference (mirrors PyTorch training-mode forward).
# ---------------------------------------------------------------------------
def init_params(key, in_channel, domain_num):
    hidden = in_channel // 2
    k1, k2, k3, k4 = jax.random.split(key, 4)
    # Linear1: PyTorch weight (hidden, in_channel); stored transposed (in, hidden)
    w1 = jax.random.normal(k1, (in_channel, hidden), jnp.float32) * 0.05
    b1 = jax.random.normal(k2, (1, hidden), jnp.float32) * 0.05
    # BatchNorm1d affine params (gamma=1, beta=0 is the PyTorch default init)
    gamma = jnp.ones((1, hidden), jnp.float32)
    beta = jnp.zeros((1, hidden), jnp.float32)
    # Linear2: PyTorch weight (domain_num, hidden); stored transposed
    w2 = jax.random.normal(k3, (hidden, domain_num), jnp.float32) * 0.05
    b2 = jax.random.normal(k4, (1, domain_num), jnp.float32) * 0.05
    return (w1, b1, gamma, beta, w2, b2)


def _reference_forward(x_nchw, params):
    w1, b1, gamma, beta, w2, b2 = params
    pooled = jnp.mean(x_nchw.astype(jnp.float32), axis=(2, 3))
    h = jnp.maximum(pooled @ w1 + b1, 0.0)
    mu = jnp.mean(h, axis=0, keepdims=True)
    var = jnp.mean((h - mu) ** 2, axis=0, keepdims=True)
    hn = (h - mu) / jnp.sqrt(var + _BN_EPS) * gamma + beta
    return hn @ w2 + b2


if __name__ == "__main__":
    key = jax.random.PRNGKey(0)

    # Case 1: module-default small shapes -> fused fast path (single call).
    N, C, H, W, DOMAIN = 4, 32, 8, 8, 4
    kx, kp, key = jax.random.split(key, 3)
    x = jax.random.normal(kx, (N, C, H, W), jnp.float32)
    params = init_params(kp, C, DOMAIN)

    out = jax.block_until_ready(domain_classifier_forward(x, params))
    ref = _reference_forward(x, params)
    assert out.shape == (N, DOMAIN)
    assert jnp.allclose(out, ref, atol=1e-3, rtol=1e-3), "case-1 mismatch"

    # Case 2: force the streaming path (fused_bytes_threshold=0) with a tiny
    # block budget so the grid has multiple N- and HW-tiles and exercises the
    # accumulator / pl.when path.
    N2, C2, H2, W2, DOMAIN2 = 16, 128, 16, 16, 3
    kx2, kp2, key = jax.random.split(key, 3)
    x2 = jax.random.normal(kx2, (N2, C2, H2, W2), jnp.float32)
    params2 = init_params(kp2, C2, DOMAIN2)

    out2 = jax.block_until_ready(
        domain_classifier_forward(x2, params2, block_bytes_target=64 * 1024,
                                  fused_bytes_threshold=0))
    ref2 = _reference_forward(x2, params2)
    assert out2.shape == (N2, DOMAIN2)
    assert jnp.allclose(out2, ref2, atol=1e-3, rtol=1e-3), "case-2 mismatch"

    # Case 3: single N-tile (N=4) -> exercises the 2-way HW partial-sum split
    # that keeps both v7x TensorCores streaming.
    N3, C3, H3, W3, DOMAIN3 = 4, 128, 16, 32, 5
    kx3, kp3, key = jax.random.split(key, 3)
    x3 = jax.random.normal(kx3, (N3, C3, H3, W3), jnp.float32)
    params3 = init_params(kp3, C3, DOMAIN3)

    out3 = jax.block_until_ready(
        domain_classifier_forward(x3, params3, block_bytes_target=64 * 1024,
                                  fused_bytes_threshold=0))
    ref3 = _reference_forward(x3, params3)
    assert out3.shape == (N3, DOMAIN3)
    assert jnp.allclose(out3, ref3, atol=1e-3, rtol=1e-3), "case-3 mismatch"

    # Case 4: producer-native bf16 input streamed as-is (no wrapper cast);
    # accumulation stays f32.  Reference uses the same bf16-rounded values.
    x4 = x2.astype(jnp.bfloat16)
    out4 = jax.block_until_ready(
        domain_classifier_forward(x4, params2, block_bytes_target=64 * 1024,
                                  fused_bytes_threshold=0))
    ref4 = _reference_forward(x4.astype(jnp.float32), params2)
    assert out4.shape == (N2, DOMAIN2)
    assert bool(jnp.all(jnp.isfinite(out4)))
    assert jnp.allclose(out4, ref4, atol=2e-3, rtol=2e-3), "case-4 (bf16) mismatch"

    print("KERNEL_OK")
</pallas_src>

<mosaic_0001>
module attributes {stable_mosaic.version = 11 : i64} {
  func.func @_fused_kernel(%arg0: memref<4x32x64xf32, #tpu.memory_space<vmem>>, %arg1: memref<32x16xf32, #tpu.memory_space<vmem>>, %arg2: memref<1x16xf32, #tpu.memory_space<vmem>>, %arg3: memref<1x16xf32, #tpu.memory_space<vmem>>, %arg4: memref<1x16xf32, #tpu.memory_space<vmem>>, %arg5: memref<16x4xf32, #tpu.memory_space<vmem>>, %arg6: memref<1x4xf32, #tpu.memory_space<vmem>>, %arg7: memref<4x4xf32, #tpu.memory_space<vmem>>) attributes {dimension_semantics = [], scalar_prefetch = 0 : i64, scratch_operands = 0 : i64, tpu.core_type = #tpu.core_type<tc>} {
    %c0 = arith.constant 0 : index
    %c0_0 = arith.constant 0 : index
    %c0_1 = arith.constant 0 : index
    %0 = vector.load %arg0[%c0, %c0_0, %c0_1] : memref<4x32x64xf32, #tpu.memory_space<vmem>>, vector<4x32x64xf32>
    %cst = arith.constant dense<0.000000e+00> : vector<4x32xf32>
    %1 = vector.multi_reduction <add>, %0, %cst [2] : vector<4x32x64xf32> to vector<4x32xf32>
    %c0_2 = arith.constant 0 : index
    %c0_3 = arith.constant 0 : index
    %2 = vector.load %arg1[%c0_2, %c0_3] : memref<32x16xf32, #tpu.memory_space<vmem>>, vector<32x16xf32>
    %c0_4 = arith.constant 0 : index
    %c0_5 = arith.constant 0 : index
    %3 = vector.load %arg2[%c0_4, %c0_5] : memref<1x16xf32, #tpu.memory_space<vmem>>, vector<1x16xf32>
    %c0_6 = arith.constant 0 : index
    %c0_7 = arith.constant 0 : index
    %4 = vector.load %arg3[%c0_6, %c0_7] : memref<1x16xf32, #tpu.memory_space<vmem>>, vector<1x16xf32>
    %c0_8 = arith.constant 0 : index
    %c0_9 = arith.constant 0 : index
    %5 = vector.load %arg4[%c0_8, %c0_9] : memref<1x16xf32, #tpu.memory_space<vmem>>, vector<1x16xf32>
    %c0_10 = arith.constant 0 : index
    %c0_11 = arith.constant 0 : index
    %6 = vector.load %arg5[%c0_10, %c0_11] : memref<16x4xf32, #tpu.memory_space<vmem>>, vector<16x4xf32>
    %c0_12 = arith.constant 0 : index
    %c0_13 = arith.constant 0 : index
    %7 = vector.load %arg6[%c0_12, %c0_13] : memref<1x4xf32, #tpu.memory_space<vmem>>, vector<1x4xf32>
    %cst_14 = arith.constant dense<0.000000e+00> : vector<4x16xf32>
    %8 = tpu.matmul %1, %2, %cst_14 {dimension_numbers = #tpu.dot_dimension_numbers<[1], [0], [0], [1], [0, 0, 1, 1], [], []>} : vector<4x32xf32>, vector<32x16xf32>, vector<4x16xf32> -> vector<4x16xf32>
    %9 = vector.broadcast %3 : vector<1x16xf32> to vector<4x16xf32>
    %10 = arith.addf %8, %9 : vector<4x16xf32>
    %cst_15 = arith.constant 0.000000e+00 : f32
    %11 = vector.broadcast %cst_15 : f32 to vector<4x16xf32>
    %12 = arith.maximumf %10, %11 : vector<4x16xf32>
    %cst_16 = arith.constant dense<0.000000e+00> : vector<16xf32>
    %13 = vector.multi_reduction <add>, %12, %cst_16 [0] : vector<4x16xf32> to vector<16xf32>
    %14 = vector.shape_cast %13 : vector<16xf32> to vector<1x16xf32>
    %cst_17 = arith.constant 4.000000e+00 : f32
    %15 = vector.broadcast %cst_17 : f32 to vector<1x16xf32>
    %16 = arith.divf %14, %15 : vector<1x16xf32>
    %17 = vector.broadcast %16 : vector<1x16xf32> to vector<4x16xf32>
    %18 = arith.subf %12, %17 : vector<4x16xf32>
    %19 = arith.mulf %18, %18 : vector<4x16xf32>
    %cst_18 = arith.constant dense<0.000000e+00> : vector<16xf32>
    %20 = vector.multi_reduction <add>, %19, %cst_18 [0] : vector<4x16xf32> to vector<16xf32>
    %21 = vector.shape_cast %20 : vector<16xf32> to vector<1x16xf32>
    %cst_19 = arith.constant 4.000000e+00 : f32
    %22 = vector.broadcast %cst_19 : f32 to vector<1x16xf32>
    %23 = arith.divf %21, %22 : vector<1x16xf32>
    %24 = vector.broadcast %16 : vector<1x16xf32> to vector<4x16xf32>
    %25 = arith.subf %12, %24 : vector<4x16xf32>
    %cst_20 = arith.constant 9.99999974E-6 : f32
    %26 = vector.broadcast %cst_20 : f32 to vector<1x16xf32>
    %27 = arith.addf %23, %26 : vector<1x16xf32>
    %28 = math.rsqrt %27 : vector<1x16xf32>
    %29 = vector.broadcast %28 : vector<1x16xf32> to vector<4x16xf32>
    %30 = arith.mulf %25, %29 : vector<4x16xf32>
    %31 = vector.broadcast %4 : vector<1x16xf32> to vector<4x16xf32>
    %32 = arith.mulf %30, %31 : vector<4x16xf32>
    %33 = vector.broadcast %5 : vector<1x16xf32> to vector<4x16xf32>
    %34 = arith.addf %32, %33 : vector<4x16xf32>
    %cst_21 = arith.constant dense<0.000000e+00> : vector<4x4xf32>
    %35 = tpu.matmul %34, %6, %cst_21 {dimension_numbers = #tpu.dot_dimension_numbers<[1], [0], [0], [1], [0, 0, 1, 1], [], []>} : vector<4x16xf32>, vector<16x4xf32>, vector<4x4xf32> -> vector<4x4xf32>
    %36 = vector.broadcast %7 : vector<1x4xf32> to vector<4x4xf32>
    %37 = arith.addf %35, %36 : vector<4x4xf32>
    %c0_22 = arith.constant 0 : index
    %c0_23 = arith.constant 0 : index
    %38 = vector.load %arg7[%c0_22, %c0_23] : memref<4x4xf32, #tpu.memory_space<vmem>>, vector<4x4xf32>
    tpu.vector_store %arg7[%c0_22, %c0_23], %37 {strides = array<i32>} : memref<4x4xf32, #tpu.memory_space<vmem>>, vector<4x4xf32>,
    return
  }
}

</mosaic_0001>

<bundles_post_ra>
// kernel: tpu_custom_call.1
= control target key start
LH: loop header
LB: loop body
LE: loop exit
PB: predicated region body
PF: predicated region fallthrough
CT: control target
= control target key end

     0   :  { %12 = vsyncpa [#allocation3], 0  ;;  %s663_s0 = inlined_call_operand.hbm [shape: f32[4,32,64], index: 0, kind: input, shape index: {}]   ;;  %s664_s1 = inlined_call_operand.vmem [shape: f32[32,16], index: 1, kind: input, shape index: {}]   ;;  %s665_s2 = inlined_call_operand.vmem [shape: f32[1,16], index: 2, kind: input, shape index: {}]   ;;  %s666_s3 = inlined_call_operand.vmem [shape: f32[1,16], index: 3, kind: input, shape index: {}]   ;;  %s667_s4 = inlined_call_operand.vmem [shape: f32[1,16], index: 4, kind: input, shape index: {}]   ;;  %s668_s5 = inlined_call_operand.vmem [shape: f32[16,4], index: 5, kind: input, shape index: {}]   ;;  %s669_s6 = inlined_call_operand.vmem [shape: f32[1,4], index: 6, kind: input, shape index: {}]   ;;  %s670_s7 = inlined_call_operand.hbm [shape: f32[4,4], index: 7, kind: output, shape index: {}]  }
   0x1   :  { %13 = vsyncpa [#allocation4], 0  ;;  %s534_s24 = smov [#allocation2]   ;;  %s486_s28 = scalar_lea.hbm %s663_s0, 2048 }
   0x2   :  { %s19_s25 = sshll.u32 %s534_s24, 4  ;;  %p487_p0 = scmp.ne.s32.totalorder %s663_s0, %s486_s28  ;;  %s20_s25 = int_to_ptr.vmem [resolvable:$true] %s19_s25 }
   0x3   :  { %p490_p1 = scmp.lt.u32.totalorder %s486_s28, %s663_s0 }
   0x5   :  { %p492_p2 = pnand %p490_p1, %p487_p0 }
   0x7   :  { %495 = shalt.err (!%p492_p2)
}
   0x8   :  { %s496_s10 = scalar_lea.vmem %s20_s25, 2048  ;;  %p501_p4 = scmp.lt.s32.totalorder %s20_s25, %s20_s25 }
   0x9   :  { %p497_p3 = scmp.ne.s32.totalorder %s20_s25, %s496_s10  ;;  %p502_p5 = scmp.lt.s32.totalorder %s496_s10, %s496_s10 }
   0xb   :  { %p503_p6 = por %p502_p5, %p501_p4 }
   0xd   :  { %p504_p7 = pnand %p503_p6, %p497_p3 }
   0xf   :  { %507 = shalt.err (!%p504_p7)
}
  0x10   :  { %s535_s11 = smov 128   ;;  %s536_s12 = smov 8  }
  0x11   :  { %25 = dma.hbm_to_vmem [thread:$0]  %s663_s0, 2048, %s20_s25, [#allocation3], %s535_s11, %s535_s11, %s536_s12  }
  0x12   :  { %530 = dma.done.wait [#allocation3], 2048  }
  0x13   :  { %531 = vsyncadd [#allocation3], 4294965248  ;;  %vm57_vm0 = vcmask 523264   ;;  %v45_v0 = vld [vmem:[#allocation2 + $0x20] sm:$0xff]  ;;  %v46_v2 = vld [vmem:[#allocation2 + $0x28] sm:$0xff]  ;;  %v537_v35 = vmov 0.0|0.0   ;;  %v138_v44 = vlaneseq }
  0x14   :  { %v41_v1 = vld [vmem:[#allocation2] sm:$0xff]  ;;  %v70_v3 = vsel %vm57_vm0, %v45_v0, 0.0  ;;  %v42_v5 = vld [vmem:[#allocation2 + $0x8] sm:$0xff]  ;;  %v73_v6 = vsel %vm57_vm0, %v46_v2, 0.0  ;;  %v47_v8 = vld [vmem:[#allocation2 + $0x30] sm:$0xff]  ;;  %468 = vmatprep.subr.bf16.mxu0 %v537_v35  ;;  %474 = vmatprep.subr.bf16.mxu1 %v537_v35  ;;  %vm538_vm1 = vmmov 0  }
  0x15   :  { %v58_v4 = vsel %vm57_vm0, %v41_v1, 0.0  ;;  %71 = vadd.xlane.f32.xlu1 %v70_v3  ;;  %v61_v7 = vsel %vm57_vm0, %v42_v5, 0.0  ;;  %v43_v9 = vld [vmem:[#allocation2 + $0x10] sm:$0xff]  ;;  %v76_v10 = vsel %vm57_vm0, %v47_v8, 0.0  ;;  %v50_v12 = vld [vmem:[#allocation2 + $0x48] sm:$0xff]  ;;  %v49_v13 = vld [vmem:[#allocation2 + $0x40] sm:$0xff] }
  0x16   :  { %59 = vadd.xlane.f32.xlu0 %v58_v4  ;;  %v64_v11 = vsel %vm57_vm0, %v43_v9, 0.0  ;;  %v85_v14 = vsel %vm57_vm0, %v50_v12, 0.0  ;;  %v82_v15 = vsel %vm57_vm0, %v49_v13, 0.0  ;;  %v48_v16 = vld [vmem:[#allocation2 + $0x38] sm:$0xff]  ;;  %v53_v20 = vld [vmem:[#allocation2 + $0x60] sm:$0xff]  ;;  %v51_v21 = vld [vmem:[#allocation2 + $0x50] sm:$0xff] }
  0x17   :  { %v44_v17 = vld [vmem:[#allocation2 + $0x18] sm:$0xff]  ;;  %v79_v18 = vsel %vm57_vm0, %v48_v16, 0.0  ;;  %v94_v22 = vsel %vm57_vm0, %v53_v20, 0.0  ;;  %v88_v23 = vsel %vm57_vm0, %v51_v21, 0.0  ;;  %v54_v25 = vld [vmem:[#allocation2 + $0x68] sm:$0xff]  ;;  %v55_v28 = vld [vmem:[#allocation2 + $0x70] sm:$0xff] }
  0x18   :  { %v67_v19 = vsel %vm57_vm0, %v44_v17, 0.0  ;;  %v52_v24 = vld [vmem:[#allocation2 + $0x58] sm:$0xff]  ;;  %v97_v27 = vsel %vm57_vm0, %v54_v25, 0.0  ;;  %v100_v30 = vsel %vm57_vm0, %v55_v28, 0.0  ;;  %v106_v32 = vld [vmem:[%s664_s1] sm:$0xff]  ;;  %v107_v33 = vld [vmem:[%s664_s1 + $0x8] sm:$0xff] }
  0x19   :  { %74 = vadd.xlane.f32.xlu1 %v73_v6  ;;  %v91_v26 = vsel %vm57_vm0, %v52_v24, 0.0  ;;  %v56_v29 = vld [vmem:[#allocation2 + $0x78] sm:$0xff]  ;;  %v469_v34 = vpack.c.bf16 %v107_v33, %v106_v32  ;;  %v108_v36 = vld [vmem:[%s664_s1 + $0x10] sm:$0xff]  ;;  %v539_v39 = vmov 0.0   ;;  %v139_v47 = vand.u32 127, %v138_v44  ;;  %v113_v33 = vld [vmem:[%s668_s5] sm:$0xff] }
  0x1a   :  { %62 = vadd.xlane.f32.xlu0 %v61_v7  ;;  %v103_v31 = vsel %vm57_vm0, %v56_v29, 0.0  ;;  %v109_v37 = vld [vmem:[%s664_s1 + $0x18] sm:$0xff]  ;;  %458 = vmatprep.mubr.msk.f32.mxu0 %vm538_vm1, %v539_v39  ;;  %v141_v50 = vshrl.u32 %v138_v44, 7  ;;  %vm149_vm2 = vcmask 130112   ;;  %vm156_vm3 = vcmask 195712   ;;  %s540_s8 = smov [#allocation5]  }
  0x1b   :  { %470 = vmatpush3.bf16.msra.mxu0 %v469_v34  ;;  %v472_v38 = vpack.c.bf16 %v109_v37, %v108_v36  ;;  %465 = vmatprep.mubr.msk.f32.mxu1 %vm538_vm1, %v539_v39  ;;  %v144_v51 = vadd.s32 4294967288, %v139_v47  ;;  %v151_v52 = vadd.s32 4294967280, %v139_v47  ;;  %v158_v53 = vadd.s32 4294967272, %v139_v47  ;;  %v114_v34 = vld [vmem:[%s668_s5 + $0x8] sm:$0xff]  ;;  %v436_v36 = vld [vmem:[%s665_s2] ss:$0 sm:$0xff] }
  0x1c   :  { %471 = vmatprep.subr.bf16.mxu0 %v537_v35  ;;  %v142_v56 = vsub.s32 %v139_v47, %v141_v50  ;;  %vm163_vm4 = vcmask 261312   ;;  %vm222_vm5 = vcmask 1041409   ;;  %vm224_vm6 = vcmask 1042434   ;;  %s427_s9 = sshll.u32 %s540_s8, 4  ;;  %s428_s9 = int_to_ptr.vmem [resolvable:$true] %s427_s9 }
  0x1d   :  { %77 = vadd.xlane.f32.xlu1 %v76_v10  ;;  %v147_v57 = vsub.s32 %v144_v51, %v141_v50  ;;  %v154_v58 = vsub.s32 %v151_v52, %v141_v50  ;;  %v161_v59 = vsub.s32 %v158_v53, %v141_v50  ;;  %vm226_vm7 = vcmask 1043459   ;;  %p513_p9 = scmp.lt.s32.totalorder %s428_s9, %s428_s9 }
  0x1e   :  { %65 = vadd.xlane.f32.xlu0 %v64_v11  ;;  %vm228_vm8 = vcmask 261120   ;;  %v475_v35 = vpack.c.bf16 %v114_v34, %v113_v33  ;;  %vm302_vm9 = vcmask 125952   ;;  %vm345_vm10 = vcmask 130048  }
  0x1f   :  { %473 = vmatpush3.bf16.msra.mxu0 %v472_v38  ;;  %vm419_vm11 = vcmask 27648  }
  0x20   :  { %476 = vmatpush3.bf16.msra.mxu1 %v475_v35 }
  0x21   :  { %86 = vadd.xlane.f32.xlu1 %v85_v14 }
  0x22   :  { %83 = vadd.xlane.f32.xlu0 %v82_v15 }
  0x25   :  { %80 = vadd.xlane.f32.xlu1 %v79_v18 }
  0x26   :  { %68 = vadd.xlane.f32.xlu0 %v67_v19 }
  0x29   :  { %95 = vadd.xlane.f32.xlu1 %v94_v22 }
  0x2a   :  { %89 = vadd.xlane.f32.xlu0 %v88_v23 }
  0x2d   :  { %92 = vadd.xlane.f32.xlu1 %v91_v26 }
  0x2e   :  { %98 = vadd.xlane.f32.xlu0 %v97_v27 }
  0x31   :  { %104 = vadd.xlane.f32.xlu1 %v103_v31 }
  0x32   :  { %101 = vadd.xlane.f32.xlu0 %v100_v30 }
  0xa2   :  { %v72_v40 = vpop.xlane.xlu1 %71 }
  0xa3   :  { %v60_v41 = vpop.xlane.xlu0 %59  ;;  %v168_v62 = vrot.slane %v72_v40, %v142_v56 }
  0xa4   :  { %v143_v5 = vrot.slane %v60_v41, %v142_v56 }
  0xa6   :  { %v75_v42 = vpop.xlane.xlu1 %74 }
  0xa7   :  { %v63_v43 = vpop.xlane.xlu0 %62  ;;  %v172_v63 = vrot.slane %v75_v42, %v147_v57 }
  0xa8   :  { %v148_v0 = vrot.slane %v63_v43, %v147_v57 }
  0xa9   :  { %v173_v12 = vsel %vm149_vm2, %v172_v63, %v168_v62  ;;  %v439_v63 = vld [vmem:[%s667_s4] ss:$0 sm:$0xff] }
  0xaa   :  { %v78_v45 = vpop.xlane.xlu1 %77  ;;  %v150_v13 = vsel %vm149_vm2, %v148_v0, %v143_v5 }
  0xab   :  { %v66_v46 = vpop.xlane.xlu0 %65  ;;  %v177_v1 = vrot.slane %v78_v45, %v154_v58 }
  0xac   :  { %v155_v2 = vrot.slane %v66_v46, %v154_v58 }
  0xad   :  { %v178_v15 = vsel %vm156_vm3, %v177_v1, %v173_v12 }
  0xae   :  { %v87_v48 = vpop.xlane.xlu1 %86  ;;  %v157_v16 = vsel %vm156_vm3, %v155_v2, %v150_v13  ;;  %v440_v2 = vld [vmem:[%s669_s6] ss:$0 sm:$0xff] }
  0xaf   :  { %v84_v49 = vpop.xlane.xlu0 %83  ;;  %v191_v3 = vrot.slane %v87_v48, %v147_v57 }
  0xb0   :  { %v187_v4 = vrot.slane %v84_v49, %v142_v56 }
  0xb2   :  { %v81_v54 = vpop.xlane.xlu1 %80  ;;  %v192_v17 = vsel %vm149_vm2, %v191_v3, %v187_v4 }
  0xb3   :  { %v69_v55 = vpop.xlane.xlu0 %68  ;;  %v182_v6 = vrot.slane %v81_v54, %v161_v59 }
  0xb4   :  { %v162_v7 = vrot.slane %v69_v55, %v161_v59 }
  0xb5   :  { %v183_v18 = vsel %vm163_vm4, %v182_v6, %v178_v15 }
  0xb6   :  { %v96_v60 = vpop.xlane.xlu1 %95  ;;  %v164_v19 = vsel %vm163_vm4, %v162_v7, %v157_v16 }
  0xb7   :  { %v90_v61 = vpop.xlane.xlu0 %89  ;;  %v206_v20 = vrot.slane %v96_v60, %v142_v56  ;;  %v223_v28 = vsel %vm222_vm5, %v183_v18, %v164_v19 }
  0xb8   :  { %v196_v8 = vrot.slane %v90_v61, %v154_v58  ;;  %v438_v61 = vld [vmem:[%s666_s3] ss:$0 sm:$0xff]  ;;  %s508_s3 = scalar_lea.vmem %s428_s9, 64 }
  0xb9   :  { %p509_p8 = scmp.ne.s32.totalorder %s428_s9, %s508_s3  ;;  %p514_p10 = scmp.lt.s32.totalorder %s508_s3, %s508_s3 }
  0xba   :  { %v93_v9 = vpop.xlane.xlu1 %92  ;;  %v197_v21 = vsel %vm156_vm3, %v196_v8, %v192_v17 }
  0xbb   :  { %v99_v10 = vpop.xlane.xlu0 %98  ;;  %v201_v11 = vrot.slane %v93_v9, %v161_v59  ;;  %p515_p11 = por %p514_p10, %p513_p9 }
  0xbc   :  { %v210_v14 = vrot.slane %v99_v10, %v147_v57 }
  0xbd   :  { %v202_v24 = vsel %vm163_vm4, %v201_v11, %v197_v21  ;;  %p516_p12 = pnand %p515_p11, %p509_p8 }
  0xbe   :  { %v105_v23 = vpop.xlane.xlu1 %104  ;;  %v211_v27 = vsel %vm149_vm2, %v210_v14, %v206_v20  ;;  %v225_v31 = vsel %vm224_vm6, %v202_v24, %v223_v28 }
  0xbf   :  { %v102_v22 = vpop.xlane.xlu0 %101  ;;  %v220_v26 = vrot.slane %v105_v23, %v161_v59 }
  0xc0   :  { %v215_v25 = vrot.slane %v102_v22, %v154_v58 }
  0xc2   :  { %v216_v29 = vsel %vm156_vm3, %v215_v25, %v211_v27 }
  0xc3   :  { %v221_v30 = vsel %vm163_vm4, %v220_v26, %v216_v29 }
  0xc4   :  { %v227_v32 = vsel %vm226_vm7, %v221_v30, %v225_v31 }
  0xc5   :  { %459 = vmatmul.mubr.msk.f32.vlgmr.msra.gmra.mrb[0].mxu0 %vm228_vm8, %v227_v32 }
 0x198   :  { %v297_v37 = vpop.f32.mrb[0].mxu0 }
 0x199   :  { %v298_v38 = vadd.f32 %v436_v36, %v297_v37  ;;  %v460_v39 = vpop.f32.mrb[1].mxu0 }
 0x19b   :  { %v301_v40 = vmax.f32 %v298_v38, 0.0 }
 0x19d   :  { %v303_v41 = vsel %vm302_vm9, %v301_v40, 0.0 }
 0x19e   :  { %v304_v42 = vrot.slane %v303_v41, 4 }
 0x1a0   :  { %v305_v43 = vadd.f32 %v304_v42, %v303_v41 }
 0x1a2   :  { %v306_v44 = vrot.slane %v305_v43, 2 }
 0x1a4   :  { %v307_v45 = vadd.f32 %v306_v44, %v305_v43 }
 0x1a6   :  { %v308_v46 = vrot.slane %v307_v45, 1 }
 0x1a8   :  { %v309_v47 = vadd.f32 %v308_v46, %v307_v45 }
 0x1aa   :  { %v311_v48 = vmul.f32 0.25, %v309_v47 }
 0x1ac   :  { %v312_v49 = vsub.f32 %v301_v40, %v311_v48 }
 0x1ae   :  { %v313_v50 = vmul.f32 %v312_v49, %v312_v49 }
 0x1b0   :  { %v314_v51 = vsel %vm302_vm9, %v313_v50, 0.0 }
 0x1b1   :  { %v315_v52 = vrot.slane %v314_v51, 4 }
 0x1b3   :  { %v316_v53 = vadd.f32 %v315_v52, %v314_v51 }
 0x1b5   :  { %v317_v54 = vrot.slane %v316_v53, 2 }
 0x1b7   :  { %v318_v55 = vadd.f32 %v317_v54, %v316_v53 }
 0x1b9   :  { %v319_v56 = vrot.slane %v318_v55, 1 }
 0x1bb   :  { %v320_v57 = vadd.f32 %v319_v56, %v318_v55 }
 0x1bd   :  { %v321_v58 = vmul.f32 0.25, %v320_v57 }
 0x1bf   :  { %v322_v59 = vadd.f32 1e-05, %v321_v58 }
 0x1c1   :  { %484 = vrsqrt.f32 %v322_v59 }
 0x1cb   :  { %v485_v60 = vpop.eup %484 }
 0x1cc   :  { %v324_v62 = vmul.f32 %v485_v60, %v312_v49 }
 0x1ce   :  { %v331_v0 = vmul.f32 %v438_v61, %v324_v62 }
 0x1d0   :  { %v338_v1 = vadd.f32 %v439_v63, %v331_v0 }
 0x1d2   :  { %466 = vmatmul.mubr.msk.f32.vlgmr.msra.gmra.mrb[0].mxu1 %vm345_vm10, %v338_v1 }
 0x2a5   :  { %v415_v3 = vpop.f32.mrb[0].mxu1 }
 0x2a6   :  { %v416_v4 = vadd.f32 %v440_v2, %v415_v3  ;;  %v467_v5 = vpop.f32.mrb[1].mxu1 }
 0x2a8   :  { %420 = vst.msk [vmem:[#allocation5] sm:$0xf] %vm419_vm11, %v416_v4 }
 0x2a9   :  { %519 = shalt.err (!%p516_p12)
}
 0x2aa   :  { %s520_s11 = scalar_lea.hbm %s670_s7, 64 }
 0x2ab   :  { %p521_p13 = scmp.ne.s32.totalorder %s670_s7, %s520_s11  ;;  %p524_p0 = scmp.lt.u32.totalorder %s520_s11, %s670_s7 }
 0x2ad   :  { %p526_p1 = pnand %p524_p0, %p521_p13 }
 0x2af   :  { %529 = shalt.err (!%p526_p1)
}
 0x2b0   :  { %430 = dma.vmem_to_hbm [thread:$0]  %s428_s9, 64, %s670_s7, [#allocation4]  }
 0x2b1   :  { %532 = dma.done.wait [#allocation4], 64  }
 0x2b2   :  { %533 = vsyncadd [#allocation4], 4294967232 }
 0x2b3   :  { %434 = vsyncpa [#allocation3], 1 }
 0x2b4   :  { %435 = vsyncpa [#allocation4], 1 }

</bundles_post_ra>
